<compile_context>
chip_gen: v6e
topology: v6e:2x2x1
jax: 0.10.0
libtpu: 0.0.40
codegen_flags: <defaults>
</compile_context>

<pallas_src>
import functools
import jax
import jax.numpy as jnp
from jax.experimental import pallas as pl
from jax.experimental.pallas import tpu as pltpu

# ---------------- small, deterministic config ----------------
B = 2                  # batch
IN_CHANS = 3
IMG = 24               # (module uses 84; shrunk for the synthetic kernel)
PATCH = 6
NUM_PATCHES = (IMG // PATCH) ** 2        # 16
EMBED_DIM = 128        # lane-aligned (vit_large uses 1024; shrunk)
DEPTH = 2
NUM_HEADS = 4
MLP_RATIO = 4
PRED_DIM = EMBED_DIM // 2                # predictor_embed_dim = embed_dim // 2
PRED_DEPTH = 2
PRED_HEADS = NUM_HEADS
N_ENC_KEEP = 8
N_PRED_KEEP = 4
N_MASKS_PRED = 2
NUM_EPOCHS = 1
IPE = 9600


# ======================= Pallas kernels =======================

def _block_kernel(x_ref, g1_ref, b1_ref, wqkv_ref, bqkv_ref, wproj_ref, bproj_ref,
                  g2_ref, b2_ref, wfc1_ref, bfc1_ref, wfc2_ref, bfc2_ref,
                  o_ref, *, num_heads, eps):
    """One full transformer block for a single batch element, fused."""
    x = x_ref[0].astype(jnp.float32)                  # [N, D]
    N, D = x.shape
    dh = D // num_heads
    scale = float(dh) ** -0.5

    def ln(v, g, b):                                  # f32 statistics
        mu = jnp.mean(v, axis=-1, keepdims=True)
        vc = v - mu
        var = jnp.mean(vc * vc, axis=-1, keepdims=True)
        return vc * jax.lax.rsqrt(var + eps) * g + b

    def mm(a, w):                                     # bf16 MXU, f32 accumulate
        return jnp.dot(a.astype(jnp.bfloat16), w.astype(jnp.bfloat16),
                       preferred_element_type=jnp.float32)

    # ---- attention branch ----
    h = ln(x, g1_ref[...], b1_ref[...])
    qkv = mm(h, wqkv_ref[...]) + bqkv_ref[...]        # [N, 3D] f32
    q = qkv[:, 0:D]
    k = qkv[:, D:2 * D]
    v = qkv[:, 2 * D:3 * D]

    heads = []
    for hd in range(num_heads):                       # unrolled, all in VMEM
        lo, hi = hd * dh, (hd + 1) * dh
        qh = q[:, lo:hi].astype(jnp.bfloat16)
        kh = k[:, lo:hi].astype(jnp.bfloat16)
        vh = v[:, lo:hi].astype(jnp.bfloat16)
        s = jax.lax.dot_general(qh, kh, (((1,), (1,)), ((), ())),
                                preferred_element_type=jnp.float32) * scale
        s = s - jnp.max(s, axis=-1, keepdims=True)    # softmax in f32
        p = jnp.exp(s)
        p = p * pl.reciprocal(jnp.sum(p, axis=-1, keepdims=True), approx=True)
        heads.append(jnp.dot(p.astype(jnp.bfloat16), vh,
                             preferred_element_type=jnp.float32))
    a = jnp.concatenate(heads, axis=-1)               # [N, D]
    a = mm(a, wproj_ref[...]) + bproj_ref[...]
    x = x + a

    # ---- MLP branch ----
    h2 = ln(x, g2_ref[...], b2_ref[...])
    f = mm(h2, wfc1_ref[...]) + bfc1_ref[...]
    # TODO(synk): PyTorch nn.GELU default is the exact erf GELU; tanh
    # approximation used here (erf lowering not guaranteed in Mosaic).
    c = 0.7978845608028654  # sqrt(2/pi)
    f = 0.5 * f * (1.0 + jnp.tanh(c * (f + 0.044715 * f * f * f)))
    f = mm(f, wfc2_ref[...]) + bfc2_ref[...]
    o_ref[0] = (x + f).astype(o_ref.dtype)


def pallas_block(x, p, num_heads):
    Bq, N, D = x.shape
    hidden = p["fc1_w"].shape[1]

    def wspec(shape):
        return pl.BlockSpec(shape, lambda i: (0, 0))

    return pl.pallas_call(
        functools.partial(_block_kernel, num_heads=num_heads, eps=1e-6),
        grid=(Bq,),
        in_specs=[
            pl.BlockSpec((1, N, D), lambda i: (i, 0, 0)),
            wspec((1, D)), wspec((1, D)),
            wspec((D, 3 * D)), wspec((1, 3 * D)),
            wspec((D, D)), wspec((1, D)),
            wspec((1, D)), wspec((1, D)),
            wspec((D, hidden)), wspec((1, hidden)),
            wspec((hidden, D)), wspec((1, D)),
        ],
        out_specs=pl.BlockSpec((1, N, D), lambda i: (i, 0, 0)),
        out_shape=jax.ShapeDtypeStruct((Bq, N, D), jnp.float32),
        compiler_params=pltpu.CompilerParams(dimension_semantics=("parallel",)),
    )(
        x,
        p["norm1_g"].reshape(1, D), p["norm1_b"].reshape(1, D),
        p["qkv_w"].astype(jnp.bfloat16), p["qkv_b"].reshape(1, 3 * D),
        p["proj_w"].astype(jnp.bfloat16), p["proj_b"].reshape(1, D),
        p["norm2_g"].reshape(1, D), p["norm2_b"].reshape(1, D),
        p["fc1_w"].astype(jnp.bfloat16), p["fc1_b"].reshape(1, hidden),
        p["fc2_w"].astype(jnp.bfloat16), p["fc2_b"].reshape(1, D),
    )


def _linear_kernel(x_ref, w_ref, b_ref, o_ref):
    acc = jnp.dot(x_ref[...].astype(jnp.bfloat16), w_ref[...],
                  preferred_element_type=jnp.float32)
    o_ref[...] = (acc + b_ref[...]).astype(o_ref.dtype)


def pallas_linear(x2d, w, b):
    M, K = x2d.shape
    N = w.shape[1]
    return pl.pallas_call(
        _linear_kernel,
        grid=(1,),
        in_specs=[pl.BlockSpec((M, K), lambda i: (0, 0)),
                  pl.BlockSpec((K, N), lambda i: (0, 0)),
                  pl.BlockSpec((1, N), lambda i: (0, 0))],
        out_specs=pl.BlockSpec((M, N), lambda i: (0, 0)),
        out_shape=jax.ShapeDtypeStruct((M, N), jnp.float32),
    )(x2d, w.astype(jnp.bfloat16), b.reshape(1, N))


def _layernorm_kernel(x_ref, g_ref, b_ref, o_ref, *, eps):
    x = x_ref[...].astype(jnp.float32)
    mu = jnp.mean(x, axis=-1, keepdims=True)
    xc = x - mu
    var = jnp.mean(xc * xc, axis=-1, keepdims=True)
    y = xc * jax.lax.rsqrt(var + eps)
    o_ref[...] = (y * g_ref[...] + b_ref[...]).astype(o_ref.dtype)


def pallas_layernorm(x2d, g, b, eps):
    M, D = x2d.shape
    return pl.pallas_call(
        functools.partial(_layernorm_kernel, eps=eps),
        grid=(1,),
        in_specs=[pl.BlockSpec((M, D), lambda i: (0, 0)),
                  pl.BlockSpec((1, D), lambda i: (0, 0)),
                  pl.BlockSpec((1, D), lambda i: (0, 0))],
        out_specs=pl.BlockSpec((M, D), lambda i: (0, 0)),
        out_shape=jax.ShapeDtypeStruct((M, D), jnp.float32),
    )(x2d, g.reshape(1, D), b.reshape(1, D))


def _smooth_l1_kernel(z_ref, h_ref, o_ref, *, inv_count):
    d = z_ref[...].astype(jnp.float32) - h_ref[...].astype(jnp.float32)
    ad = jnp.abs(d)
    val = jnp.where(ad < 1.0, 0.5 * d * d, ad - 0.5)
    o_ref[...] = (jnp.sum(val) * inv_count).reshape(1, 1)


def pallas_smooth_l1(z, h):
    z2 = z.reshape(-1, z.shape[-1])
    h2 = h.reshape(-1, h.shape[-1])
    M, D = z2.shape
    out = pl.pallas_call(
        functools.partial(_smooth_l1_kernel, inv_count=1.0 / float(M * D)),
        grid=(1,),
        in_specs=[pl.BlockSpec((M, D), lambda i: (0, 0))] * 2,
        out_specs=pl.BlockSpec((1, 1), lambda i: (0, 0)),
        out_shape=jax.ShapeDtypeStruct((1, 1), jnp.float32),
    )(z2, h2)
    return out[0, 0]


def _ema_kernel(pk_ref, pq_ref, o_ref, *, m):
    o_ref[...] = (m * pk_ref[...] + (1.0 - m) * pq_ref[...]).astype(o_ref.dtype)


def pallas_ema_leaf(pk, pq, m):
    """In-place-style EMA of one parameter leaf (target aliased to output)."""
    shape = pk.shape
    if pk.ndim == 1:
        pk2, pq2 = pk.reshape(1, -1), pq.reshape(1, -1)
    else:
        pk2, pq2 = pk.reshape(-1, shape[-1]), pq.reshape(-1, shape[-1])
    R, C = pk2.shape
    out = pl.pallas_call(
        functools.partial(_ema_kernel, m=float(m)),
        grid=(1,),
        in_specs=[pl.BlockSpec((R, C), lambda i: (0, 0))] * 2,
        out_specs=pl.BlockSpec((R, C), lambda i: (0, 0)),
        out_shape=jax.ShapeDtypeStruct((R, C), jnp.float32),
        input_output_aliases={0: 0},
    )(pk2, pq2)
    return out.reshape(shape)


def ema_update_tree(tgt, src, m):
    return jax.tree_util.tree_map(lambda k, q: pallas_ema_leaf(k, q, m), tgt, src)


# ======================= model glue (plain JAX) =======================

def apply_masks(x, masks):
    all_x = []
    for msk in masks:
        idx = jnp.broadcast_to(msk[:, :, None], (x.shape[0], msk.shape[1], x.shape[-1]))
        all_x.append(jnp.take_along_axis(x, idx, axis=1))
    return jnp.concatenate(all_x, axis=0)


def repeat_interleave_batch(x, Bn, repeat):
    Nb = x.shape[0] // Bn
    return jnp.concatenate(
        [jnp.concatenate([x[i * Bn:(i + 1) * Bn] for _ in range(repeat)], axis=0)
         for i in range(Nb)], axis=0)


def patch_embed(imgs, p):
    Bn, C, H, W = imgs.shape
    hp, wp = H // PATCH, W // PATCH
    x = imgs.reshape(Bn, C, hp, PATCH, wp, PATCH)
    x = x.transpose(0, 2, 4, 1, 3, 5).reshape(Bn * hp * wp, C * PATCH * PATCH)
    x = pallas_linear(x, p["patch_w"], p["patch_b"])          # == Conv2d(k=stride=patch)
    return x.reshape(Bn, hp * wp, EMBED_DIM)


def vit_forward(p, imgs, masks=None, num_heads=NUM_HEADS):
    x = patch_embed(imgs, p)
    x = x + p["pos_embed"]
    if masks is not None:
        x = apply_masks(x, masks)
    for blk in p["blocks"]:
        x = pallas_block(x, blk, num_heads)
    Bq, N, D = x.shape
    x = pallas_layernorm(x.reshape(Bq * N, D), p["norm_g"], p["norm_b"], 1e-6)
    return x.reshape(Bq, N, D)


def predictor_forward(p, x, masks_x, masks, num_heads=PRED_HEADS):
    B0, N0, D0 = x.shape
    Bq = B0 // len(masks_x)
    x = pallas_linear(x.reshape(B0 * N0, D0), p["embed_w"], p["embed_b"]).reshape(B0, N0, PRED_DIM)
    x_pos = jnp.broadcast_to(p["pos_embed"], (Bq, NUM_PATCHES, PRED_DIM))
    x = x + apply_masks(x_pos, masks_x)
    N_ctxt = x.shape[1]
    pos_embs = jnp.broadcast_to(p["pos_embed"], (Bq, NUM_PATCHES, PRED_DIM))
    pos_embs = apply_masks(pos_embs, masks)
    pos_embs = repeat_interleave_batch(pos_embs, Bq, repeat=len(masks_x))
    pred_tokens = jnp.broadcast_to(p["mask_token"],
                                   (pos_embs.shape[0], pos_embs.shape[1], PRED_DIM)) + pos_embs
    x = jnp.tile(x, (len(masks), 1, 1))
    x = jnp.concatenate([x, pred_tokens], axis=1)
    for blk in p["blocks"]:
        x = pallas_block(x, blk, num_heads)
    Bt, Nt, Dt = x.shape
    x = pallas_layernorm(x.reshape(Bt * Nt, Dt), p["norm_g"], p["norm_b"], 1e-6).reshape(Bt, Nt, Dt)
    x = x[:, N_ctxt:]
    Bt, Nt, Dt = x.shape
    x = pallas_linear(x.reshape(Bt * Nt, Dt), p["proj_w"], p["proj_b"])
    return x.reshape(Bt, Nt, EMBED_DIM)


def i_jepa_forward(encoder_p, predictor_p, target_p, imgs, masks_enc, masks_pred, m):
    # momentum update of target encoder params (per-leaf, in-place-aliased)
    target_p = ema_update_tree(target_p, encoder_p, m)

    # forward_target (no grad)
    h = vit_forward(target_p, imgs)
    Bh, Nh, Dh = h.shape
    h = pallas_layernorm(h.reshape(Bh * Nh, Dh),
                         jnp.ones((Dh,), jnp.float32), jnp.zeros((Dh,), jnp.float32),
                         1e-5).reshape(Bh, Nh, Dh)          # F.layer_norm, no affine
    h = apply_masks(h, masks_pred)
    h = repeat_interleave_batch(h, Bh, repeat=len(masks_enc))
    h = jax.lax.stop_gradient(h)

    # forward_context
    z = vit_forward(encoder_p, imgs, masks_enc)
    z = predictor_forward(predictor_p, z, masks_enc, masks_pred)

    loss = pallas_smooth_l1(z, h)                           # F.smooth_l1_loss (mean, beta=1)
    return loss, target_p


# ======================= parameter init =======================

def init_params(key):
    keys = iter(jax.random.split(key, 64))

    def lin(fan_in, fan_out):
        w = jax.random.normal(next(keys), (fan_in, fan_out), jnp.float32) * 0.02
        return w, jnp.zeros((fan_out,), jnp.float32)

    def block_params(dim, hidden):
        qkv_w, qkv_b = lin(dim, 3 * dim)
        proj_w, proj_b = lin(dim, dim)
        fc1_w, fc1_b = lin(dim, hidden)
        fc2_w, fc2_b = lin(hidden, dim)
        return dict(norm1_g=jnp.ones((dim,), jnp.float32), norm1_b=jnp.zeros((dim,), jnp.float32),
                    qkv_w=qkv_w, qkv_b=qkv_b, proj_w=proj_w, proj_b=proj_b,
                    norm2_g=jnp.ones((dim,), jnp.float32), norm2_b=jnp.zeros((dim,), jnp.float32),
                    fc1_w=fc1_w, fc1_b=fc1_b, fc2_w=fc2_w, fc2_b=fc2_b)

    patch_w, patch_b = lin(IN_CHANS * PATCH * PATCH, EMBED_DIM)
    encoder = dict(
        patch_w=patch_w, patch_b=patch_b,
        pos_embed=jax.random.normal(next(keys), (1, NUM_PATCHES, EMBED_DIM), jnp.float32) * 0.02,
        blocks=[block_params(EMBED_DIM, EMBED_DIM * MLP_RATIO) for _ in range(DEPTH)],
        norm_g=jnp.ones((EMBED_DIM,), jnp.float32), norm_b=jnp.zeros((EMBED_DIM,), jnp.float32))

    emb_w, emb_b = lin(EMBED_DIM, PRED_DIM)
    prj_w, prj_b = lin(PRED_DIM, EMBED_DIM)
    predictor = dict(
        embed_w=emb_w, embed_b=emb_b,
        mask_token=jax.random.normal(next(keys), (1, 1, PRED_DIM), jnp.float32) * 0.02,
        pos_embed=jax.random.normal(next(keys), (1, NUM_PATCHES, PRED_DIM), jnp.float32) * 0.02,
        blocks=[block_params(PRED_DIM, PRED_DIM * MLP_RATIO) for _ in range(PRED_DEPTH)],
        norm_g=jnp.ones((PRED_DIM,), jnp.float32), norm_b=jnp.zeros((PRED_DIM,), jnp.float32),
        proj_w=prj_w, proj_b=prj_b)
    return encoder, predictor


if __name__ == "__main__":
    key = jax.random.PRNGKey(0)
    k_param, k_img, k_m1, k_m2 = jax.random.split(key, 4)

    encoder_p, predictor_p = init_params(k_param)
    # target_encoder = deepcopy(encoder): true copy so the aliased EMA update
    # never donates a buffer the context encoder still needs.
    target_p = jax.tree_util.tree_map(lambda a: jnp.array(a, copy=True), encoder_p)

    imgs = jax.random.normal(k_img, (B, IN_CHANS, IMG, IMG), jnp.float32)

    perm1 = jax.random.permutation(k_m1, NUM_PATCHES)
    masks_enc = [jnp.stack([perm1[:N_ENC_KEEP]] * B, axis=0).astype(jnp.int32)]
    perm2 = jax.random.permutation(k_m2, NUM_PATCHES)
    masks_pred = [jnp.stack([perm2[j * N_PRED_KEEP:(j + 1) * N_PRED_KEEP]] * B,
                            axis=0).astype(jnp.int32)
                  for j in range(N_MASKS_PRED)]

    momentum_scheduler = (0.996 + i * (1.0 - 0.996) / (IPE * NUM_EPOCHS)
                          for i in range(int(IPE * NUM_EPOCHS) + 1))
    m = next(momentum_scheduler)

    loss, target_p = i_jepa_forward(encoder_p, predictor_p, target_p, imgs,
                                    masks_enc, masks_pred, m)
    jax.block_until_ready(loss)
    assert loss.shape == ()
    assert bool(jnp.isfinite(loss))
    print("KERNEL_OK")
</pallas_src>

<mosaic_0001>
module attributes {stable_mosaic.version = 11 : i64} {
  func.func @_ema_kernel(%arg0: i32, %arg1: memref<1x512xf32, #tpu.memory_space<vmem>>, %arg2: memref<1x512xf32, #tpu.memory_space<vmem>>, %arg3: memref<1x512xf32, #tpu.memory_space<vmem>>) attributes {dimension_semantics = [#tpu.dimension_semantics<arbitrary>], iteration_bounds = array<i64: 1>, scalar_prefetch = 0 : i64, scratch_operands = 0 : i64, tpu.core_type = #tpu.core_type<tc>, window_params = [{pipeline_mode = #tpu.pipeline_mode<synchronous>, transform_indices = @transform_0, window_bounds = array<i64: 1, 512>}, {pipeline_mode = #tpu.pipeline_mode<synchronous>, transform_indices = @transform_1, window_bounds = array<i64: 1, 512>}, {pipeline_mode = #tpu.pipeline_mode<synchronous>, transform_indices = @transform_2, window_bounds = array<i64: 1, 512>}]} {
    %c0 = arith.constant 0 : index
    %c0_0 = arith.constant 0 : index
    %0 = vector.load %arg1[%c0, %c0_0] : memref<1x512xf32, #tpu.memory_space<vmem>>, vector<1x512xf32>
    %cst = arith.constant 0.995999991 : f32
    %1 = vector.broadcast %cst : f32 to vector<1x512xf32>
    %2 = arith.mulf %1, %0 : vector<1x512xf32>
    %c0_1 = arith.constant 0 : index
    %c0_2 = arith.constant 0 : index
    %3 = vector.load %arg2[%c0_1, %c0_2] : memref<1x512xf32, #tpu.memory_space<vmem>>, vector<1x512xf32>
    %cst_3 = arith.constant 4.000000e-03 : f32
    %4 = vector.broadcast %cst_3 : f32 to vector<1x512xf32>
    %5 = arith.mulf %4, %3 : vector<1x512xf32>
    %6 = arith.addf %2, %5 : vector<1x512xf32>
    %c0_4 = arith.constant 0 : index
    %c0_5 = arith.constant 0 : index
    %7 = vector.load %arg3[%c0_4, %c0_5] : memref<1x512xf32, #tpu.memory_space<vmem>>, vector<1x512xf32>
    tpu.vector_store %arg3[%c0_4, %c0_5], %6 {strides = array<i32>} : memref<1x512xf32, #tpu.memory_space<vmem>>, vector<1x512xf32>,
    return
  }
  func.func @transform_0(%arg0: i32) -> (i32, i32) {
    %c0_i32 = arith.constant 0 : i32
    %c0_i32_0 = arith.constant 0 : i32
    %c0_i32_1 = arith.constant 0 : i32
    return %c0_i32, %c0_i32_0 : i32, i32
  }
  func.func @transform_1(%arg0: i32) -> (i32, i32) {
    %c0_i32 = arith.constant 0 : i32
    %c0_i32_0 = arith.constant 0 : i32
    %c0_i32_1 = arith.constant 0 : i32
    return %c0_i32, %c0_i32_0 : i32, i32
  }
  func.func @transform_2(%arg0: i32) -> (i32, i32) {
    %c0_i32 = arith.constant 0 : i32
    %c0_i32_0 = arith.constant 0 : i32
    %c0_i32_1 = arith.constant 0 : i32
    return %c0_i32, %c0_i32_0 : i32, i32
  }
}

</mosaic_0001>

<bundles_post_ra>
// kernel: tpu_custom_call.1
= control target key start
LH: loop header
LB: loop body
LE: loop exit
PB: predicated region body
PF: predicated region fallthrough
CT: control target
= control target key end

     0   :  { %7 = vsyncpa [#allocation3], 0  ;;  %s121_s0 = inlined_call_operand.hbm [shape: f32[1,512], index: 0, kind: input, shape index: {}, may-alias: {0,2}]   ;;  %s122_s1 = inlined_call_operand.vmem [shape: f32[1,512], index: 1, kind: input, shape index: {}]   ;;  %s123_s2 = inlined_call_operand.hbm [shape: f32[1,512], index: 2, kind: output, shape index: {}, may-alias: {0,2}]  }
   0x1   :  { %8 = vsyncpa [#allocation4], 0  ;;  %s95_s9 = smov [#allocation2]  }
   0x2   :  { %s15_s10 = sshll.u32 %s95_s9, 4  ;;  %s16_s10 = int_to_ptr.vmem [resolvable:$true] %s15_s10 }
   0x3   :  { %s59_s11 = scalar_lea.vmem %s16_s10, 64  ;;  %p64_p1 = scmp.lt.s32.totalorder %s16_s10, %s16_s10 }
   0x4   :  { %p60_p0 = scmp.ne.s32.totalorder %s16_s10, %s59_s11  ;;  %p65_p2 = scmp.lt.s32.totalorder %s59_s11, %s59_s11 }
   0x6   :  { %p66_p3 = por %p65_p2, %p64_p1 }
   0x8   :  { %p67_p4 = pnand %p66_p3, %p60_p0 }
   0xa   :  { %70 = shalt.err (!%p67_p4)
}
   0xb   :  { %18 = dma.hbm_to_vmem [thread:$0]  %s121_s0, 64, %s16_s10, [#allocation3]  }
   0xc   :  { %91 = dma.done.wait [#allocation3], 64  }
   0xd   :  { %92 = vsyncadd [#allocation3], 4294967232  ;;  %v29_v0 = vlaneseq  ;;  %v24_v1 = vld [vmem:[#allocation2] sm:$0xf]  ;;  %s96_s16 = smov [#allocation5]  }
   0xe   :  { %v26_v2 = vld [vmem:[%s122_s1] sm:$0xf]  ;;  %s40_s17 = sshll.u32 %s96_s16, 4  ;;  %v25_v3 = vmul.f32 0.996, %v24_v1  ;;  %s41_s17 = int_to_ptr.vmem [resolvable:$true] %s40_s17 }
   0xf   :  { %v27_v4 = vmul.f32 0.004, %v26_v2  ;;  %vm31_vm0 = vcmp.lt.s32.totalorder %v29_v0, 512  ;;  %s71_s18 = scalar_lea.vmem %s41_s17, 64  ;;  %p76_p6 = scmp.lt.s32.totalorder %s41_s17, %s41_s17 }
  0x10   :  { %p72_p5 = scmp.ne.s32.totalorder %s41_s17, %s71_s18  ;;  %p77_p7 = scmp.lt.s32.totalorder %s71_s18, %s71_s18 }
  0x11   :  { %v28_v5 = vadd.f32 %v27_v4, %v25_v3 }
  0x12   :  { %p78_p8 = por %p77_p7, %p76_p6 }
  0x13   :  { %33 = vst.msk [vmem:[#allocation5] sm:$0xf] %vm31_vm0, %v28_v5 }
  0x14   :  { %p79_p9 = pnand %p78_p8, %p72_p5 }
  0x16   :  { %82 = shalt.err (!%p79_p9)
}
  0x17   :  { %43 = dma.vmem_to_hbm [thread:$0]  %s41_s17, 64, %s123_s2, [#allocation4]  }
  0x18   :  { %93 = dma.done.wait [#allocation4], 64  }
  0x19   :  { %94 = vsyncadd [#allocation4], 4294967232 }
  0x1a   :  { %47 = vsyncpa [#allocation3], 1 }
  0x1b   :  { %48 = vsyncpa [#allocation4], 1 }

</bundles_post_ra>
